<compile_context>
chip_gen: v7x
topology: tpu7x:2x2x1
jax: 0.10.0
libtpu: 0.0.40
codegen_flags: <defaults>
</compile_context>

<pallas_src>
import jax
import jax.numpy as jnp
from jax.experimental import pallas as pl
from jax.experimental.pallas import tpu as pltpu


def _mlp_kernel(x_ref, w1_ref, b1_ref, w2_ref, b2_ref, o_ref):
    x = x_ref[...]                      # [tb, obs]     f32
    w1 = w1_ref[...]                    # [obs, hidden] f32 (already [in, out])
    obs = w1_ref.shape[0]               # static -> Python unroll

    # ---- Layer 1 on the VPU: h = b1 + sum_k x[:, k] * w1[k, :] ----
    # K (= obs) is tiny, so a handful of broadcast FMAs on one vreg beats the
    # MXU vmatmul push + result-FIFO drain latency on every generation.
    h = b1_ref[...]                     # [1, hidden], broadcasts over batch
    for k in range(obs):
        h = h + x[:, k:k + 1] * w1[k:k + 1, :]
    h = jnp.maximum(h, 0.0)             # ReLU

    # ---- Layer 2 on the MXU: out = h @ W2 + b2 ----
    out = jnp.dot(h, w2_ref[...], preferred_element_type=jnp.float32)
    out = out + b2_ref[...]
    o_ref[...] = out.astype(o_ref.dtype)


def net_forward(x, w1, b1, w2, b2, *, tb=None):
    """Forward of Net: ReLU(x @ W1 + b1) @ W2 + b2.

    x:  [B, obs_size]            f32
    w1: [obs_size, hidden]       f32   (already [in, out] -- no per-call transpose)
    b1: [hidden]                 f32
    w2: [hidden, n_actions]      f32   (already [in, out])
    b2: [n_actions]              f32
    returns [B, n_actions]       f32
    """
    B, obs_size = x.shape
    hidden = w1.shape[1]
    n_actions = w2.shape[1]

    # Batch tile: amortize per-call / per-grid-step overhead when B is large,
    # keep second-to-last dim a multiple of 8 (sublane constraint).
    if tb is None:
        tb = min(512, max(8, B))
    tb = max(8, (tb // 8) * 8)
    Bp = pl.cdiv(B, tb) * tb
    if Bp != B:
        x = jnp.pad(x, ((0, Bp - B), (0, 0)))

    b1_2d = b1.reshape(1, hidden)        # [1, hidden]
    b2_2d = b2.reshape(1, n_actions)     # [1, n_actions]

    flops = 2 * Bp * (obs_size * hidden + hidden * n_actions)
    bytes_accessed = 4 * (Bp * obs_size + obs_size * hidden + hidden
                          + hidden * n_actions + n_actions + Bp * n_actions)

    # NOTE: at these toy sizes VMEM is a non-issue; if obs/hidden ever grow,
    # budget 2 * (tb*obs + tb*hidden) * 4B against ~32 MiB scoped VMEM (v7x has
    # 64 MiB physical) or raise vmem_limit_bytes explicitly.
    out = pl.pallas_call(
        _mlp_kernel,
        out_shape=jax.ShapeDtypeStruct((Bp, n_actions), x.dtype),
        grid=(Bp // tb,),
        in_specs=[
            pl.BlockSpec((tb, obs_size), lambda i: (i, 0)),       # x: tiled on batch
            pl.BlockSpec((obs_size, hidden), lambda i: (0, 0)),   # W1: resident
            pl.BlockSpec((1, hidden), lambda i: (0, 0)),          # b1: resident
            pl.BlockSpec((hidden, n_actions), lambda i: (0, 0)),  # W2: resident
            pl.BlockSpec((1, n_actions), lambda i: (0, 0)),       # b2: resident
        ],
        out_specs=pl.BlockSpec((tb, n_actions), lambda i: (i, 0)),
        compiler_params=pltpu.CompilerParams(
            dimension_semantics=("parallel",),    # v7x: 2 TCs split the batch grid
        ),
        cost_estimate=pl.CostEstimate(
            flops=flops, transcendentals=0, bytes_accessed=bytes_accessed),
    )(x, w1, b1_2d, w2, b2_2d)

    return out[:B]


def params_from_torch_layout(w1_torch, b1, w2_torch, b2):
    """One-time conversion from PyTorch nn.Linear layout ([out, in]) to the
    [in, out] layout this kernel consumes. Do this once at load time, never in
    the per-step hot path."""
    return jnp.transpose(w1_torch), b1, jnp.transpose(w2_torch), b2


def init_net_params(key, obs_size, hidden_size, n_actions):
    """Deterministic init mimicking torch.nn.Linear default U[-1/sqrt(in), 1/sqrt(in)],
    stored directly in [in_features, out_features] layout."""
    k1, k2, k3, k4 = jax.random.split(key, 4)
    bound1 = 1.0 / jnp.sqrt(jnp.float32(obs_size))
    bound2 = 1.0 / jnp.sqrt(jnp.float32(hidden_size))
    w1 = jax.random.uniform(k1, (obs_size, hidden_size), jnp.float32, -bound1, bound1)
    b1 = jax.random.uniform(k2, (hidden_size,), jnp.float32, -bound1, bound1)
    w2 = jax.random.uniform(k3, (hidden_size, n_actions), jnp.float32, -bound2, bound2)
    b2 = jax.random.uniform(k4, (n_actions,), jnp.float32, -bound2, bound2)
    return w1, b1, w2, b2


if __name__ == "__main__":
    # CartPole-like sizes: obs_size=4, hidden=32, n_actions=2
    obs_size, hidden_size, n_actions = 4, 32, 2

    key = jax.random.PRNGKey(0)
    kx, kp, kx2 = jax.random.split(key, 3)
    w1, b1, w2, b2 = init_net_params(kp, obs_size, hidden_size, n_actions)

    def ref_fn(xa):
        return jnp.maximum(xa @ w1 + b1, 0.0) @ w2 + b2

    # Small batch (single grid step, full-array blocks).
    x = jax.random.normal(kx, (8, obs_size), jnp.float32)
    out = jax.block_until_ready(net_forward(x, w1, b1, w2, b2))
    assert out.shape == (8, n_actions)
    assert jnp.allclose(out, ref_fn(x), atol=1e-5, rtol=1e-5)

    # Larger, non-multiple batch exercising the grid + padding + resident weights.
    x2 = jax.random.normal(kx2, (200, obs_size), jnp.float32)
    out2 = jax.block_until_ready(net_forward(x2, w1, b1, w2, b2, tb=64))
    assert out2.shape == (200, n_actions)
    assert jnp.allclose(out2, ref_fn(x2), atol=1e-5, rtol=1e-5)

    print("KERNEL_OK")
</pallas_src>

<mosaic_0001>
module attributes {stable_mosaic.version = 11 : i64} {
  func.func @_mlp_kernel(%arg0: i32, %arg1: memref<8x4xf32, #tpu.memory_space<vmem>>, %arg2: memref<4x32xf32, #tpu.memory_space<vmem>>, %arg3: memref<1x32xf32, #tpu.memory_space<vmem>>, %arg4: memref<32x2xf32, #tpu.memory_space<vmem>>, %arg5: memref<1x2xf32, #tpu.memory_space<vmem>>, %arg6: memref<8x2xf32, #tpu.memory_space<vmem>>) attributes {dimension_semantics = [#tpu.dimension_semantics<parallel>], iteration_bounds = array<i64: 1>, scalar_prefetch = 0 : i64, scratch_operands = 0 : i64, tpu.core_type = #tpu.core_type<tc>, window_params = [{transform_indices = @transform_0, window_bounds = array<i64: 8, 4>}, {pipeline_mode = #tpu.pipeline_mode<synchronous>, transform_indices = @transform_1, window_bounds = array<i64: 4, 32>}, {pipeline_mode = #tpu.pipeline_mode<synchronous>, transform_indices = @transform_2, window_bounds = array<i64: 1, 32>}, {pipeline_mode = #tpu.pipeline_mode<synchronous>, transform_indices = @transform_3, window_bounds = array<i64: 32, 2>}, {pipeline_mode = #tpu.pipeline_mode<synchronous>, transform_indices = @transform_4, window_bounds = array<i64: 1, 2>}, {transform_indices = @transform_5, window_bounds = array<i64: 8, 2>}]} {
    %c0 = arith.constant 0 : index
    %c0_0 = arith.constant 0 : index
    %0 = vector.load %arg1[%c0, %c0_0] : memref<8x4xf32, #tpu.memory_space<vmem>>, vector<8x4xf32>
    %c0_1 = arith.constant 0 : index
    %c0_2 = arith.constant 0 : index
    %1 = vector.load %arg2[%c0_1, %c0_2] : memref<4x32xf32, #tpu.memory_space<vmem>>, vector<4x32xf32>
    %c0_3 = arith.constant 0 : index
    %c0_4 = arith.constant 0 : index
    %2 = vector.load %arg3[%c0_3, %c0_4] : memref<1x32xf32, #tpu.memory_space<vmem>>, vector<1x32xf32>
    %3 = vector.extract_strided_slice %0 {offsets = [0, 0], sizes = [8, 1], strides = [1, 1]} : vector<8x4xf32> to vector<8x1xf32>
    %4 = vector.extract_strided_slice %1 {offsets = [0, 0], sizes = [1, 32], strides = [1, 1]} : vector<4x32xf32> to vector<1x32xf32>
    %5 = vector.broadcast %3 : vector<8x1xf32> to vector<8x32xf32>
    %6 = vector.broadcast %4 : vector<1x32xf32> to vector<8x32xf32>
    %7 = arith.mulf %5, %6 : vector<8x32xf32>
    %8 = vector.broadcast %2 : vector<1x32xf32> to vector<8x32xf32>
    %9 = arith.addf %8, %7 : vector<8x32xf32>
    %10 = vector.extract_strided_slice %0 {offsets = [0, 1], sizes = [8, 1], strides = [1, 1]} : vector<8x4xf32> to vector<8x1xf32>
    %11 = vector.extract_strided_slice %1 {offsets = [1, 0], sizes = [1, 32], strides = [1, 1]} : vector<4x32xf32> to vector<1x32xf32>
    %12 = vector.broadcast %10 : vector<8x1xf32> to vector<8x32xf32>
    %13 = vector.broadcast %11 : vector<1x32xf32> to vector<8x32xf32>
    %14 = arith.mulf %12, %13 : vector<8x32xf32>
    %15 = arith.addf %9, %14 : vector<8x32xf32>
    %16 = vector.extract_strided_slice %0 {offsets = [0, 2], sizes = [8, 1], strides = [1, 1]} : vector<8x4xf32> to vector<8x1xf32>
    %17 = vector.extract_strided_slice %1 {offsets = [2, 0], sizes = [1, 32], strides = [1, 1]} : vector<4x32xf32> to vector<1x32xf32>
    %18 = vector.broadcast %16 : vector<8x1xf32> to vector<8x32xf32>
    %19 = vector.broadcast %17 : vector<1x32xf32> to vector<8x32xf32>
    %20 = arith.mulf %18, %19 : vector<8x32xf32>
    %21 = arith.addf %15, %20 : vector<8x32xf32>
    %22 = vector.extract_strided_slice %0 {offsets = [0, 3], sizes = [8, 1], strides = [1, 1]} : vector<8x4xf32> to vector<8x1xf32>
    %23 = vector.extract_strided_slice %1 {offsets = [3, 0], sizes = [1, 32], strides = [1, 1]} : vector<4x32xf32> to vector<1x32xf32>
    %24 = vector.broadcast %22 : vector<8x1xf32> to vector<8x32xf32>
    %25 = vector.broadcast %23 : vector<1x32xf32> to vector<8x32xf32>
    %26 = arith.mulf %24, %25 : vector<8x32xf32>
    %27 = arith.addf %21, %26 : vector<8x32xf32>
    %cst = arith.constant 0.000000e+00 : f32
    %28 = vector.broadcast %cst : f32 to vector<8x32xf32>
    %29 = arith.maximumf %27, %28 : vector<8x32xf32>
    %c0_5 = arith.constant 0 : index
    %c0_6 = arith.constant 0 : index
    %30 = vector.load %arg4[%c0_5, %c0_6] : memref<32x2xf32, #tpu.memory_space<vmem>>, vector<32x2xf32>
    %cst_7 = arith.constant dense<0.000000e+00> : vector<8x2xf32>
    %31 = tpu.matmul %29, %30, %cst_7 {dimension_numbers = #tpu.dot_dimension_numbers<[1], [0], [0], [1], [0, 0, 1, 1], [], []>} : vector<8x32xf32>, vector<32x2xf32>, vector<8x2xf32> -> vector<8x2xf32>
    %c0_8 = arith.constant 0 : index
    %c0_9 = arith.constant 0 : index
    %32 = vector.load %arg5[%c0_8, %c0_9] : memref<1x2xf32, #tpu.memory_space<vmem>>, vector<1x2xf32>
    %33 = vector.broadcast %32 : vector<1x2xf32> to vector<8x2xf32>
    %34 = arith.addf %31, %33 : vector<8x2xf32>
    %c0_10 = arith.constant 0 : index
    %c0_11 = arith.constant 0 : index
    %35 = vector.load %arg6[%c0_10, %c0_11] : memref<8x2xf32, #tpu.memory_space<vmem>>, vector<8x2xf32>
    tpu.vector_store %arg6[%c0_10, %c0_11], %34 {strides = array<i32>} : memref<8x2xf32, #tpu.memory_space<vmem>>, vector<8x2xf32>,
    return
  }
  func.func @transform_0(%arg0: i32) -> (i32, i32) {
    %c0_i32 = arith.constant 0 : i32
    %c0_i32_0 = arith.constant 0 : i32
    return %arg0, %c0_i32 : i32, i32
  }
  func.func @transform_1(%arg0: i32) -> (i32, i32) {
    %c0_i32 = arith.constant 0 : i32
    %c0_i32_0 = arith.constant 0 : i32
    %c0_i32_1 = arith.constant 0 : i32
    return %c0_i32, %c0_i32_0 : i32, i32
  }
  func.func @transform_2(%arg0: i32) -> (i32, i32) {
    %c0_i32 = arith.constant 0 : i32
    %c0_i32_0 = arith.constant 0 : i32
    %c0_i32_1 = arith.constant 0 : i32
    return %c0_i32, %c0_i32_0 : i32, i32
  }
  func.func @transform_3(%arg0: i32) -> (i32, i32) {
    %c0_i32 = arith.constant 0 : i32
    %c0_i32_0 = arith.constant 0 : i32
    %c0_i32_1 = arith.constant 0 : i32
    return %c0_i32, %c0_i32_0 : i32, i32
  }
  func.func @transform_4(%arg0: i32) -> (i32, i32) {
    %c0_i32 = arith.constant 0 : i32
    %c0_i32_0 = arith.constant 0 : i32
    %c0_i32_1 = arith.constant 0 : i32
    return %c0_i32, %c0_i32_0 : i32, i32
  }
  func.func @transform_5(%arg0: i32) -> (i32, i32) {
    %c0_i32 = arith.constant 0 : i32
    %c0_i32_0 = arith.constant 0 : i32
    return %arg0, %c0_i32 : i32, i32
  }
}

</mosaic_0001>

<bundles_post_ra>
// kernel: tpu_custom_call.1
= control target key start
LH: loop header
LB: loop body
LE: loop exit
PB: predicated region body
PF: predicated region fallthrough
CT: control target
= control target key end

     0   :  { %v199_v0 = vmov 0   ;;  %v200_v2 = vmov 2   ;;  %v201_v3 = vmov 1   ;;  %v202_v4 = vmov 3   ;;  %s263_s0 = inlined_call_operand.vmem [shape: f32[8,4], index: 0, kind: input, shape index: {}]   ;;  %s264_s3 = inlined_call_operand.vmem [shape: f32[32,2], index: 3, kind: input, shape index: {}]   ;;  %s265_s1 = inlined_call_operand.vmem [shape: f32[4,32], index: 1, kind: input, shape index: {}]   ;;  %s266_s2 = inlined_call_operand.vmem [shape: f32[1,32], index: 2, kind: input, shape index: {}]   ;;  %s267_s4 = inlined_call_operand.vmem [shape: f32[1,2], index: 4, kind: input, shape index: {}]   ;;  %s268_s5 = inlined_call_operand.vmem [shape: f32[8,2], index: 5, kind: output, shape index: {}]  }
   0x1   :  { %194 = vset.pattern.permute.xlu0 %v199_v0  ;;  %v20_v1 = vld [vmem:[%s263_s0] sm:$0xff]  ;;  %196 = vset.pattern.permute.xlu1 %v200_v2  ;;  %v72_v6 = vld [vmem:[%s264_s3 + $0x8] sm:$0xff]  ;;  %v203_v8 = vmov 0.0|0.0   ;;  %v73_v9 = vld [vmem:[%s264_s3 + $0x10] sm:$0xff]  ;;  %vm204_vm0 = vmmov 0   ;;  %v205_v12 = vmov 0.0   ;;  %v28_v13 = vlaneseq }
   0x2   :  { %25 = vperm.xlu0 %194, %v20_v1   ;;  %51 = vperm.xlu1 %196, %v20_v1   ;;  %v71_v5 = vld [vmem:[%s264_s3] sm:$0xff]  ;;  %v74_v10 = vld [vmem:[%s264_s3 + $0x18] sm:$0xff]  ;;  %vm82_vm1 = vcmask 261120   ;;  %vm156_vm2 = vcmask 15360  }
   0x3   :  { %v182_v7 = vpack.c.bf16 %v72_v6, %v71_v5  ;;  %181 = vmatprep.subr.bf16.mxu0 %v203_v8  ;;  %v185_v11 = vpack.c.bf16 %v74_v10, %v73_v9  ;;  %178 = vmatprep.mubr.msk.f32.mxu0 %vm204_vm0, %v205_v12  ;;  %v29_v14 = vshrl.u32 %v28_v13, 7  ;;  %v21_v16 = vld [vmem:[%s265_s1] sm:$0xf] }
   0x4   :  { %v162_v25 = vld [vmem:[%s266_s2] ss:$0 sm:$0xff] }
   0x5   :  { %183 = vmatpush3.bf16.msra.mxu0 %v182_v7  ;;  %v30_v15 = vsub.s32 0, %v29_v14  ;;  %v46_v18 = vsub.s32 1, %v29_v14  ;;  %v56_v20 = vsub.s32 2, %v29_v14  ;;  %v66_v22 = vsub.s32 3, %v29_v14  ;;  %v163_v38 = vld [vmem:[%s267_s4] ss:$0 sm:$0xff] }
   0x6   :  { %195 = vset.pattern.permute.xlu0 %v201_v3  ;;  %197 = vset.pattern.permute.xlu1 %v202_v4 }
   0x7   :  { %41 = vperm.xlu0 %195, %v20_v1   ;;  %61 = vperm.xlu1 %197, %v20_v1   ;;  %v31_v17 = vrot.slane %v21_v16, %v30_v15  ;;  %v47_v24 = vrot.slane %v21_v16, %v46_v18  ;;  %v57_v26 = vrot.slane %v21_v16, %v56_v20 }
   0x8   :  { %184 = vmatprep.subr.bf16.mxu0 %v203_v8  ;;  %v67_v27 = vrot.slane %v21_v16, %v66_v22 }
   0x9   :  { %186 = vmatpush3.bf16.msra.mxu0 %v185_v11 }
   0xb   :  { %198 = vset.pattern.permute.xlu0 %v202_v4 }
  0x81   :  { %v26_v19 = vpop.permute.xlu0 %25  ;;  %v52_v21 = vpop.permute.xlu1 %51 }
  0x82   :  { %v32_v23 = vmul.f32 %v31_v17, %v26_v19  ;;  %v58_v32 = vmul.f32 %v57_v26, %v52_v21 }
  0x84   :  { %v39_v30 = vadd.f32 %v162_v25, %v32_v23 }
  0x86   :  { %v42_v28 = vpop.permute.xlu0 %41  ;;  %v62_v29 = vpop.permute.xlu1 %61 }
  0x87   :  { %v48_v31 = vmul.f32 %v47_v24, %v42_v28  ;;  %v68_v34 = vmul.f32 %v67_v27, %v62_v29 }
  0x89   :  { %v49_v33 = vadd.f32 %v48_v31, %v39_v30 }
  0x8b   :  { %v59_v35 = vadd.f32 %v58_v32, %v49_v33 }
  0x8d   :  { %v69_v36 = vadd.f32 %v68_v34, %v59_v35 }
  0x8f   :  { %v70_v37 = vmax.f32 %v69_v36, 0.0 }
  0x91   :  { %179 = vmatmul.mubr.msk.f32.vlgmr.msra.gmra.mrb[0].mxu0 %vm82_vm1, %v70_v37 }
 0x164   :  { %v152_v39 = vpop.f32.mrb[0].mxu0 }
 0x165   :  { %v153_v40 = vadd.f32 %v163_v38, %v152_v39  ;;  %v180_v41 = vpop.f32.mrb[1].mxu0 }
 0x167   :  { %157 = vst.msk [vmem:[%s268_s5] sm:$0xff] %vm156_vm2, %v153_v40 }

</bundles_post_ra>
